<compile_context>
chip_gen: v7x
topology: tpu7x:2x2x1
jax: 0.10.0
libtpu: 0.0.40
codegen_flags: <defaults>
</compile_context>

<pallas_src>
import functools
import math

import jax
import jax.numpy as jnp
from jax import lax
from jax.experimental import pallas as pl
from jax.experimental.pallas import tpu as pltpu


def _sublane_granularity(dtype):
    # Native sublane tile: 8 for 4-byte, 16 for 2-byte, 32 for 1-byte dtypes.
    itemsize = jnp.dtype(dtype).itemsize
    return max(8, 32 // itemsize)


def _pick_tile(dim, preferred, gran=8):
    """Largest tile <= `preferred` that divides `dim` and is a multiple of
    `gran` (falls back to a multiple of 8, then the full dim — always legal)."""
    if dim <= preferred:
        return dim
    fallback = None
    for t in range(preferred, 0, -1):
        if dim % t:
            continue
        if t % gran == 0:
            return t
        if fallback is None and t % 8 == 0:
            fallback = t
    return fallback if fallback is not None else dim


def _pick_lane_tile(dim, preferred):
    """Largest tile <= `preferred` that divides `dim` and is a multiple of
    128 (lane width); falls back to the full dim (always legal)."""
    if dim <= preferred:
        return dim
    t = (preferred // 128) * 128
    while t >= 128:
        if dim % t == 0:
            return t
        t -= 128
    return dim


def _hw_budget():
    """(vmem_limit_bytes, is_v5e) derived from the attached TPU generation."""
    kind = jax.devices()[0].device_kind.lower()
    is_v5e = ("v5e" in kind) or ("v5 lite" in kind) or ("v5lite" in kind)
    is_v7 = ("v7" in kind) or ("7x" in kind)
    try:
        phys = int(pltpu.get_tpu_info().vmem_capacity_bytes)
    except Exception:   # query unavailable -> fall back on the device kind
        phys = (64 if is_v7 else 128) * 1024 * 1024
    # Leave ~16 MiB headroom for compiler-internal scratch + BlockSpec
    # double-buffers; hard-cap per generation (review: ~48-56 MiB on v7x,
    # ~96-112 MiB on v5e/v6e).
    limit = max(phys - 16 * 1024 * 1024, 32 * 1024 * 1024)
    limit = min(limit, (56 if is_v7 else 112) * 1024 * 1024)
    return limit, is_v5e


# ---------------------------------------------------------------------------
# Stage 1: fused QKV projection, tiled over (M, 3E, E) with f32 accumulator
# ---------------------------------------------------------------------------
def _qkv_proj_kernel(x_ref, w_ref, b_ref, qkv_ref, acc_ref):
    # x_ref: (TM, TKc) compute dtype.  w_ref: (TN, TKc) compute dtype in
    # PyTorch (out, in) layout.  b_ref: (1, TN) f32 (scale folded into Q).
    kk = pl.program_id(2)

    @pl.when(kk == 0)
    def _init():
        acc_ref[...] = jnp.zeros_like(acc_ref)

    # Contract over both operands' last dims: no weight transpose needed.
    acc_ref[...] += lax.dot_general(
        x_ref[...], w_ref[...], (((1,), (1,)), ((), ())),
        preferred_element_type=jnp.float32)

    @pl.when(kk == pl.num_programs(2) - 1)
    def _finalize():
        qkv_ref[...] = (acc_ref[...] + b_ref[...]).astype(qkv_ref.dtype)


# ---------------------------------------------------------------------------
# Stage 2: flash-attention-style scaled-dot-product attention
# ---------------------------------------------------------------------------
def _flash_attn_kernel(q_ref, k_ref, v_ref, o_ref, m_scr, l_scr, acc_scr,
                       *, prob_dtype, exact_final):
    ki = pl.program_id(2)

    @pl.when(ki == 0)
    def _init():
        m_scr[...] = jnp.full_like(m_scr, -jnp.inf)
        l_scr[...] = jnp.zeros_like(l_scr)
        acc_scr[...] = jnp.zeros_like(acc_scr)

    q = q_ref[...]                                     # (Tq, E) compute dtype
    k = k_ref[...]                                     # (Tk, E)
    # q already carries 1/sqrt(E); contract last dims (no k.T materialization).
    s = lax.dot_general(q, k, (((1,), (1,)), ((), ())),
                        preferred_element_type=jnp.float32)      # (Tq, Tk) f32

    m_prev = m_scr[...]                                           # (Tq, 1)
    m_new = jnp.maximum(m_prev, jnp.max(s, axis=-1, keepdims=True))
    alpha = jnp.exp(m_prev - m_new)                               # f32
    # exp in prob_dtype: bf16 on v6e/v7x (relieves the EUP slot at small E),
    # f32 on v5e / on the exact path.  Stats & accumulators stay f32.
    p = jnp.exp((s - m_new).astype(prob_dtype))
    l_scr[...] = alpha * l_scr[...] + jnp.sum(
        p.astype(jnp.float32), axis=-1, keepdims=True)
    acc_scr[...] = alpha * acc_scr[...] + jnp.dot(
        p.astype(v_ref.dtype), v_ref[...], preferred_element_type=jnp.float32)
    m_scr[...] = m_new

    @pl.when(ki == pl.num_programs(2) - 1)
    def _finalize():
        acc = acc_scr[...]
        l = l_scr[...]
        if exact_final:
            o_ref[...] = (acc / l).astype(o_ref.dtype)
        else:
            inv_l = pl.reciprocal(l, approx=True)      # EUP slot, ~free
            o_ref[...] = (acc * inv_l).astype(o_ref.dtype)


# ---------------------------------------------------------------------------
# Wrapper
# ---------------------------------------------------------------------------
@functools.partial(jax.jit, static_argnames=("compute_dtype",))
def self_attention(x, wq, bq, wk, bk, wv, bv, *, compute_dtype=jnp.bfloat16):
    """x: (B, S, E) f32. wq/wk/wv: (E, E) PyTorch (out, in). bq/bk/bv: (E,)."""
    B, S, E = x.shape
    M = B * S
    n3 = 3 * E
    scale = 1.0 / math.sqrt(E)

    vmem_limit, is_v5e = _hw_budget()
    gran = _sublane_granularity(compute_dtype)
    cdt = jnp.dtype(compute_dtype)

    # --- parameter prep (in a real model this is done once at load time) ---
    # Fused (3E, E) weight kept in (out, in) layout (no transpose needed) with
    # the softmax scale folded into the Q rows; bias stays f32.
    w_qkv = jnp.concatenate([wq * scale, wk, wv], axis=0).astype(compute_dtype)
    b_qkv = jnp.concatenate([bq * scale, bk, bv]).astype(jnp.float32)
    b_qkv = b_qkv.reshape(1, n3)
    x2 = x.reshape(M, E).astype(compute_dtype)      # row-dense M for the MXU

    # --- stage 1: fused QKV projection, single lane-dense (M, 3E) output ---
    tm = _pick_tile(M, 512, gran)        # row tile
    tn = _pick_lane_tile(n3, 512)        # fused-output tile (lane-aligned)
    tkc = _pick_lane_tile(E, 512)        # contraction tile (lane-aligned)

    qkv = pl.pallas_call(
        _qkv_proj_kernel,
        out_shape=jax.ShapeDtypeStruct((M, n3), compute_dtype),
        grid_spec=pltpu.PrefetchScalarGridSpec(
            num_scalar_prefetch=0,
            grid=(M // tm, n3 // tn, E // tkc),
            in_specs=[pl.BlockSpec((tm, tkc), lambda i, j, kk: (i, kk)),
                      pl.BlockSpec((tn, tkc), lambda i, j, kk: (j, kk)),
                      pl.BlockSpec((1, tn), lambda i, j, kk: (0, j))],
            out_specs=pl.BlockSpec((tm, tn), lambda i, j, kk: (i, j)),
            scratch_shapes=[pltpu.VMEM((tm, tn), jnp.float32)]),
        compiler_params=pltpu.CompilerParams(
            dimension_semantics=("parallel", "parallel", "arbitrary"),
            vmem_limit_bytes=vmem_limit),
    )(x2, w_qkv, b_qkv)

    # --- split the fused slab into Q/K/V views for stage 2 ------------------
    if E % 128 == 0:
        # Zero-copy: stage 2 reads q/k/v as lane-aligned column blocks of the
        # fused (B, S, 3E) slab (block width E is a multiple of 128).
        qkv3 = qkv.reshape(B, S, n3)
        q_in = k_in = v_in = qkv3
        qc, kc, vc = 0, 1, 2
    else:
        # Small-E fallback: E-wide blocks of a 3E array would violate the
        # (8, 128) lane rule, so split with a cheap wrapper view/copy instead.
        qkv4 = qkv.reshape(B, S, 3, E)
        q_in, k_in, v_in = qkv4[:, :, 0], qkv4[:, :, 1], qkv4[:, :, 2]
        qc = kc = vc = 0

    # --- stage 2: flash attention -------------------------------------------
    # Per-generation tile targets: big Tq raises arithmetic intensity of the
    # K/V re-stream (HBM-bound otherwise on v6e/v7x); v5e keeps Tk=128 for its
    # 4x128^2 MXU and smaller f32 score working set.  Tiles collapse to the
    # full (toy) sequence when S is small.
    if is_v5e:
        tq_target, tk_target = 256, 128
    else:
        tq_target, tk_target = 512, 256
    tq = _pick_tile(S, tq_target, gran)
    tk = _pick_tile(S, tk_target, gran)

    # Re-derive the stage-2 footprint against the per-generation VMEM cap
    # (matters on v7x's 64 MiB physical when E is large); shrink Tq if needed.
    out_isz = jnp.dtype(x.dtype).itemsize
    def _stage2_bytes(tq_, tk_):
        return (2 * tq_ * E * cdt.itemsize            # q window (2 buffers)
                + 4 * tk_ * E * cdt.itemsize          # k + v double buffers
                + tq_ * E * 4 + 2 * tq_ * 4           # acc / m / l scratch
                + 2 * tq_ * E * out_isz)              # output window
    while _stage2_bytes(tq, tk) > 0.6 * vmem_limit:
        new_tq = _pick_tile(S, max(tq // 2, gran), gran)
        if new_tq >= tq:
            break
        tq = new_tq
    nq, nk = S // tq, S // tk

    # Deepen the K/V pipeline only in the DMA-latency-exposed regime (long
    # K/V loop, small E); never triggered at toy shapes.
    kv_kwargs = {}
    if nk >= 3 and E <= 256:
        kv_kwargs["pipeline_mode"] = pl.Buffered(3)

    q_spec = pl.BlockSpec((pl.Squeezed(), tq, E),
                          lambda b, qi, ki: (b, qi, qc))
    k_spec = pl.BlockSpec((pl.Squeezed(), tk, E),
                          lambda b, qi, ki: (b, ki, kc), **kv_kwargs)
    v_spec = pl.BlockSpec((pl.Squeezed(), tk, E),
                          lambda b, qi, ki: (b, ki, vc), **kv_kwargs)
    o_spec = pl.BlockSpec((pl.Squeezed(), tq, E),
                          lambda b, qi, ki: (b, qi, 0))

    prob_dtype = cdt if (cdt == jnp.bfloat16 and not is_v5e) else jnp.float32
    exact_final = (cdt == jnp.float32)   # approx reciprocal only on bf16 path

    kernel = functools.partial(_flash_attn_kernel,
                               prob_dtype=prob_dtype,
                               exact_final=exact_final)

    # Output kept in x.dtype (f32) to match the PyTorch module's semantics.
    out = pl.pallas_call(
        kernel,
        out_shape=jax.ShapeDtypeStruct((B, S, E), x.dtype),
        grid_spec=pltpu.PrefetchScalarGridSpec(
            num_scalar_prefetch=0,
            grid=(B, nq, nk),
            in_specs=[q_spec, k_spec, v_spec],
            out_specs=o_spec,
            scratch_shapes=[pltpu.VMEM((tq, 1), jnp.float32),
                            pltpu.VMEM((tq, 1), jnp.float32),
                            pltpu.VMEM((tq, E), jnp.float32)]),
        compiler_params=pltpu.CompilerParams(
            dimension_semantics=("parallel", "parallel", "arbitrary"),
            vmem_limit_bytes=vmem_limit),
    )(q_in, k_in, v_in)

    return out


def _reference(x, wq, bq, wk, bk, wv, bv):
    q = x @ wq.T + bq
    k = x @ wk.T + bk
    v = x @ wv.T + bv
    scores = jnp.einsum("bqe,bke->bqk", q, k) / jnp.sqrt(
        jnp.asarray(x.shape[-1], jnp.float32))
    attn = jax.nn.softmax(scores, axis=-1)
    return jnp.einsum("bqk,bke->bqe", attn, v)


if __name__ == "__main__":
    B, S, E = 2, 8, 32  # batch, sequence, embed_size

    key = jax.random.PRNGKey(0)
    kx, kq, kbq, kk, kbk, kv, kbv = jax.random.split(key, 7)

    x = jax.random.normal(kx, (B, S, E), dtype=jnp.float32)

    # nn.Linear-style uniform(-1/sqrt(E), 1/sqrt(E)) init; weights in PyTorch
    # (out, in) layout.
    bound = 1.0 / math.sqrt(E)
    wq = jax.random.uniform(kq, (E, E), jnp.float32, -bound, bound)
    bq = jax.random.uniform(kbq, (E,), jnp.float32, -bound, bound)
    wk = jax.random.uniform(kk, (E, E), jnp.float32, -bound, bound)
    bk = jax.random.uniform(kbk, (E,), jnp.float32, -bound, bound)
    wv = jax.random.uniform(kv, (E, E), jnp.float32, -bound, bound)
    bv = jax.random.uniform(kbv, (E,), jnp.float32, -bound, bound)

    ref = _reference(x, wq, bq, wk, bk, wv, bv)

    # f32 MXU path: tight check of the kernel logic (exact softmax divide).
    out_f32 = jax.block_until_ready(
        self_attention(x, wq, bq, wk, bk, wv, bv, compute_dtype=jnp.float32))
    assert out_f32.shape == (B, S, E)
    err32 = float(jnp.max(jnp.abs(out_f32 - ref)))
    assert jnp.allclose(out_f32, ref, atol=2e-3, rtol=2e-3), \
        f"f32 path max err {err32}"

    # bf16 MXU path (default): looser tolerance for bf16 operand rounding and
    # the bf16 softmax exp; accumulation / softmax statistics are still f32.
    out_bf16 = jax.block_until_ready(
        self_attention(x, wq, bq, wk, bk, wv, bv, compute_dtype=jnp.bfloat16))
    assert out_bf16.shape == (B, S, E)
    errbf = float(jnp.max(jnp.abs(out_bf16 - ref)))
    assert jnp.allclose(out_bf16, ref, atol=5e-2, rtol=5e-2), \
        f"bf16 path max err {errbf}"

    print("KERNEL_OK")
</pallas_src>

<mosaic_0001>
module attributes {stable_mosaic.version = 11 : i64} {
  func.func @_flash_attn_kernel(%arg0: i32, %arg1: i32, %arg2: i32, %arg3: memref<1x8x32xf32, #tpu.memory_space<vmem>>, %arg4: memref<1x8x32xf32, #tpu.memory_space<vmem>>, %arg5: memref<1x8x32xf32, #tpu.memory_space<vmem>>, %arg6: memref<1x8x32xf32, #tpu.memory_space<vmem>>, %arg7: memref<8x1xf32, #tpu.memory_space<vmem>>, %arg8: memref<8x1xf32, #tpu.memory_space<vmem>>, %arg9: memref<8x32xf32, #tpu.memory_space<vmem>>) attributes {dimension_semantics = [#tpu.dimension_semantics<parallel>, #tpu.dimension_semantics<parallel>, #tpu.dimension_semantics<arbitrary>], iteration_bounds = array<i64: 2, 1, 1>, scalar_prefetch = 0 : i64, scratch_operands = 3 : i64, tpu.core_type = #tpu.core_type<tc>, window_params = [{transform_indices = @transform_0, window_bounds = array<i64: 1, 8, 32>}, {transform_indices = @transform_1, window_bounds = array<i64: 1, 8, 32>}, {transform_indices = @transform_2, window_bounds = array<i64: 1, 8, 32>}, {transform_indices = @transform_3, window_bounds = array<i64: 1, 8, 32>}]} {
    %c0_i32 = arith.constant 0 : i32
    %0 = arith.cmpi eq, %arg2, %c0_i32 : i32
    %1 = arith.extui %0 : i1 to i32
    %c0_i32_0 = arith.constant 0 : i32
    %2 = arith.cmpi ne, %1, %c0_i32_0 : i32
    scf.if %2 {
      %cst_26 = arith.constant 0xFF800000 : f32
      %35 = vector.broadcast %cst_26 : f32 to vector<8x1xf32>
      %c0_27 = arith.constant 0 : index
      %c0_28 = arith.constant 0 : index
      %36 = vector.load %arg7[%c0_27, %c0_28] : memref<8x1xf32, #tpu.memory_space<vmem>>, vector<8x1xf32>
      tpu.vector_store %arg7[%c0_27, %c0_28], %35 {strides = array<i32>} : memref<8x1xf32, #tpu.memory_space<vmem>>, vector<8x1xf32>,
      %cst_29 = arith.constant 0.000000e+00 : f32
      %37 = vector.broadcast %cst_29 : f32 to vector<8x1xf32>
      %c0_30 = arith.constant 0 : index
      %c0_31 = arith.constant 0 : index
      %38 = vector.load %arg8[%c0_30, %c0_31] : memref<8x1xf32, #tpu.memory_space<vmem>>, vector<8x1xf32>
      tpu.vector_store %arg8[%c0_30, %c0_31], %37 {strides = array<i32>} : memref<8x1xf32, #tpu.memory_space<vmem>>, vector<8x1xf32>,
      %cst_32 = arith.constant 0.000000e+00 : f32
      %39 = vector.broadcast %cst_32 : f32 to vector<8x32xf32>
      %c0_33 = arith.constant 0 : index
      %c0_34 = arith.constant 0 : index
      %40 = vector.load %arg9[%c0_33, %c0_34] : memref<8x32xf32, #tpu.memory_space<vmem>>, vector<8x32xf32>
      tpu.vector_store %arg9[%c0_33, %c0_34], %39 {strides = array<i32>} : memref<8x32xf32, #tpu.memory_space<vmem>>, vector<8x32xf32>,
    } else {
    }
    %c0 = arith.constant 0 : index
    %c0_1 = arith.constant 0 : index
    %c0_2 = arith.constant 0 : index
    %3 = vector.load %arg3[%c0, %c0_1, %c0_2] : memref<1x8x32xf32, #tpu.memory_space<vmem>>, vector<1x8x32xf32>
    %4 = vector.shape_cast %3 : vector<1x8x32xf32> to vector<8x32xf32>
    %c0_3 = arith.constant 0 : index
    %c0_4 = arith.constant 0 : index
    %c0_5 = arith.constant 0 : index
    %5 = vector.load %arg4[%c0_3, %c0_4, %c0_5] : memref<1x8x32xf32, #tpu.memory_space<vmem>>, vector<1x8x32xf32>
    %6 = vector.shape_cast %5 : vector<1x8x32xf32> to vector<8x32xf32>
    %cst = arith.constant dense<0.000000e+00> : vector<8x8xf32>
    %7 = tpu.matmul %4, %6, %cst {dimension_numbers = #tpu.dot_dimension_numbers<[1], [1], [0], [0], [0, 0, 1, 0], [], []>} : vector<8x32xf32>, vector<8x32xf32>, vector<8x8xf32> -> vector<8x8xf32>
    %c0_6 = arith.constant 0 : index
    %c0_7 = arith.constant 0 : index
    %8 = vector.load %arg7[%c0_6, %c0_7] : memref<8x1xf32, #tpu.memory_space<vmem>>, vector<8x1xf32>
    %cst_8 = arith.constant dense<0xFF800000> : vector<8xf32>
    %9 = vector.multi_reduction <maximumf>, %7, %cst_8 [1] : vector<8x8xf32> to vector<8xf32>
    %10 = vector.shape_cast %9 : vector<8xf32> to vector<8x1xf32>
    %11 = arith.maximumf %8, %10 : vector<8x1xf32>
    %12 = arith.subf %8, %11 : vector<8x1xf32>
    %13 = math.exp %12 : vector<8x1xf32>
    %14 = vector.broadcast %11 : vector<8x1xf32> to vector<8x8xf32>
    %15 = arith.subf %7, %14 : vector<8x8xf32>
    %16 = math.exp %15 : vector<8x8xf32>
    %c0_9 = arith.constant 0 : index
    %c0_10 = arith.constant 0 : index
    %17 = vector.load %arg8[%c0_9, %c0_10] : memref<8x1xf32, #tpu.memory_space<vmem>>, vector<8x1xf32>
    %18 = arith.mulf %13, %17 : vector<8x1xf32>
    %cst_11 = arith.constant dense<0.000000e+00> : vector<8xf32>
    %19 = vector.multi_reduction <add>, %16, %cst_11 [1] : vector<8x8xf32> to vector<8xf32>
    %20 = vector.shape_cast %19 : vector<8xf32> to vector<8x1xf32>
    %21 = arith.addf %18, %20 : vector<8x1xf32>
    %c0_12 = arith.constant 0 : index
    %c0_13 = arith.constant 0 : index
    %22 = vector.load %arg8[%c0_12, %c0_13] : memref<8x1xf32, #tpu.memory_space<vmem>>, vector<8x1xf32>
    tpu.vector_store %arg8[%c0_12, %c0_13], %21 {strides = array<i32>} : memref<8x1xf32, #tpu.memory_space<vmem>>, vector<8x1xf32>,
    %c0_14 = arith.constant 0 : index
    %c0_15 = arith.constant 0 : index
    %23 = vector.load %arg9[%c0_14, %c0_15] : memref<8x32xf32, #tpu.memory_space<vmem>>, vector<8x32xf32>
    %24 = vector.broadcast %13 : vector<8x1xf32> to vector<8x32xf32>
    %25 = arith.mulf %24, %23 : vector<8x32xf32>
    %c0_16 = arith.constant 0 : index
    %c0_17 = arith.constant 0 : index
    %c0_18 = arith.constant 0 : index
    %26 = vector.load %arg5[%c0_16, %c0_17, %c0_18] : memref<1x8x32xf32, #tpu.memory_space<vmem>>, vector<1x8x32xf32>
    %27 = vector.shape_cast %26 : vector<1x8x32xf32> to vector<8x32xf32>
    %cst_19 = arith.constant dense<0.000000e+00> : vector<8x32xf32>
    %28 = tpu.matmul %16, %27, %cst_19 {dimension_numbers = #tpu.dot_dimension_numbers<[1], [0], [0], [1], [0, 0, 1, 1], [], []>} : vector<8x8xf32>, vector<8x32xf32>, vector<8x32xf32> -> vector<8x32xf32>
    %29 = arith.addf %25, %28 : vector<8x32xf32>
    %c0_20 = arith.constant 0 : index
    %c0_21 = arith.constant 0 : index
    %30 = vector.load %arg9[%c0_20, %c0_21] : memref<8x32xf32, #tpu.memory_space<vmem>>, vector<8x32xf32>
    tpu.vector_store %arg9[%c0_20, %c0_21], %29 {strides = array<i32>} : memref<8x32xf32, #tpu.memory_space<vmem>>, vector<8x32xf32>,
    %c0_22 = arith.constant 0 : index
    %c0_23 = arith.constant 0 : index
    %31 = vector.load %arg7[%c0_22, %c0_23] : memref<8x1xf32, #tpu.memory_space<vmem>>, vector<8x1xf32>
    tpu.vector_store %arg7[%c0_22, %c0_23], %11 {strides = array<i32>} : memref<8x1xf32, #tpu.memory_space<vmem>>, vector<8x1xf32>,
    %c0_i32_24 = arith.constant 0 : i32
    %32 = arith.cmpi eq, %arg2, %c0_i32_24 : i32
    %33 = arith.extui %32 : i1 to i32
    %c0_i32_25 = arith.constant 0 : i32
    %34 = arith.cmpi ne, %33, %c0_i32_25 : i32
    scf.if %34 {
      %c0_26 = arith.constant 0 : index
      %c0_27 = arith.constant 0 : index
      %35 = vector.load %arg9[%c0_26, %c0_27] : memref<8x32xf32, #tpu.memory_space<vmem>>, vector<8x32xf32>
      %c0_28 = arith.constant 0 : index
      %c0_29 = arith.constant 0 : index
      %36 = vector.load %arg8[%c0_28, %c0_29] : memref<8x1xf32, #tpu.memory_space<vmem>>, vector<8x1xf32>
      %37 = vector.broadcast %36 : vector<8x1xf32> to vector<8x32xf32>
      %38 = arith.divf %35, %37 : vector<8x32xf32>
      %c0_30 = arith.constant 0 : index
      %c0_31 = arith.constant 0 : index
      %c0_32 = arith.constant 0 : index
      %39 = vector.load %arg6[%c0_30, %c0_31, %c0_32] : memref<1x8x32xf32, #tpu.memory_space<vmem>>, vector<1x8x32xf32>
      %40 = vector.shape_cast %39 : vector<1x8x32xf32> to vector<8x32xf32>
      %41 = vector.shape_cast %38 : vector<8x32xf32> to vector<1x8x32xf32>
      tpu.vector_store %arg6[%c0_30, %c0_31, %c0_32], %41 {strides = array<i32>} : memref<1x8x32xf32, #tpu.memory_space<vmem>>, vector<1x8x32xf32>,
    } else {
    }
    return
  }
  func.func @transform_0(%arg0: i32, %arg1: i32, %arg2: i32) -> (i32, i32, i32) {
    %c0_i32 = arith.constant 0 : i32
    %c0_i32_0 = arith.constant 0 : i32
    return %arg0, %arg1, %c0_i32 : i32, i32, i32
  }
  func.func @transform_1(%arg0: i32, %arg1: i32, %arg2: i32) -> (i32, i32, i32) {
    %c0_i32 = arith.constant 0 : i32
    %c0_i32_0 = arith.constant 0 : i32
    return %arg0, %arg2, %c0_i32 : i32, i32, i32
  }
  func.func @transform_2(%arg0: i32, %arg1: i32, %arg2: i32) -> (i32, i32, i32) {
    %c0_i32 = arith.constant 0 : i32
    %c0_i32_0 = arith.constant 0 : i32
    return %arg0, %arg2, %c0_i32 : i32, i32, i32
  }
  func.func @transform_3(%arg0: i32, %arg1: i32, %arg2: i32) -> (i32, i32, i32) {
    %c0_i32 = arith.constant 0 : i32
    %c0_i32_0 = arith.constant 0 : i32
    return %arg0, %arg1, %c0_i32 : i32, i32, i32
  }
}

module attributes {stable_mosaic.version = 11 : i64} {
  func.func @_qkv_proj_kernel(%arg0: i32, %arg1: i32, %arg2: i32, %arg3: memref<16x32xf32, #tpu.memory_space<vmem>>, %arg4: memref<96x32xf32, #tpu.memory_space<vmem>>, %arg5: memref<1x96xf32, #tpu.memory_space<vmem>>, %arg6: memref<16x96xf32, #tpu.memory_space<vmem>>, %arg7: memref<16x96xf32, #tpu.memory_space<vmem>>) attributes {dimension_semantics = [#tpu.dimension_semantics<parallel>, #tpu.dimension_semantics<parallel>, #tpu.dimension_semantics<arbitrary>], iteration_bounds = array<i64: 1, 1, 1>, scalar_prefetch = 0 : i64, scratch_operands = 1 : i64, tpu.core_type = #tpu.core_type<tc>, window_params = [{transform_indices = @transform_0, window_bounds = array<i64: 16, 32>}, {transform_indices = @transform_1, window_bounds = array<i64: 96, 32>}, {transform_indices = @transform_2, window_bounds = array<i64: 1, 96>}, {transform_indices = @transform_3, window_bounds = array<i64: 16, 96>}]} {
    %c0_i32 = arith.constant 0 : i32
    %0 = arith.cmpi eq, %arg2, %c0_i32 : i32
    %1 = arith.extui %0 : i1 to i32
    %c0_i32_0 = arith.constant 0 : i32
    %2 = arith.cmpi ne, %1, %c0_i32_0 : i32
    scf.if %2 {
      %cst_10 = arith.constant 0.000000e+00 : f32
      %12 = vector.broadcast %cst_10 : f32 to vector<16x96xf32>
      %c0_11 = arith.constant 0 : index
      %c0_12 = arith.constant 0 : index
      %13 = vector.load %arg7[%c0_11, %c0_12] : memref<16x96xf32, #tpu.memory_space<vmem>>, vector<16x96xf32>
      tpu.vector_store %arg7[%c0_11, %c0_12], %12 {strides = array<i32>} : memref<16x96xf32, #tpu.memory_space<vmem>>, vector<16x96xf32>,
    } else {
    }
    %c0 = arith.constant 0 : index
    %c0_1 = arith.constant 0 : index
    %3 = vector.load %arg7[%c0, %c0_1] : memref<16x96xf32, #tpu.memory_space<vmem>>, vector<16x96xf32>
    %c0_2 = arith.constant 0 : index
    %c0_3 = arith.constant 0 : index
    %4 = vector.load %arg3[%c0_2, %c0_3] : memref<16x32xf32, #tpu.memory_space<vmem>>, vector<16x32xf32>
    %c0_4 = arith.constant 0 : index
    %c0_5 = arith.constant 0 : index
    %5 = vector.load %arg4[%c0_4, %c0_5] : memref<96x32xf32, #tpu.memory_space<vmem>>, vector<96x32xf32>
    %cst = arith.constant dense<0.000000e+00> : vector<16x96xf32>
    %6 = tpu.matmul %4, %5, %cst {dimension_numbers = #tpu.dot_dimension_numbers<[1], [1], [0], [0], [0, 0, 1, 0], [], []>} : vector<16x32xf32>, vector<96x32xf32>, vector<16x96xf32> -> vector<16x96xf32>
    %7 = arith.addf %3, %6 : vector<16x96xf32>
    %c0_6 = arith.constant 0 : index
    %c0_7 = arith.constant 0 : index
    %8 = vector.load %arg7[%c0_6, %c0_7] : memref<16x96xf32, #tpu.memory_space<vmem>>, vector<16x96xf32>
    tpu.vector_store %arg7[%c0_6, %c0_7], %7 {strides = array<i32>} : memref<16x96xf32, #tpu.memory_space<vmem>>, vector<16x96xf32>,
    %c0_i32_8 = arith.constant 0 : i32
    %9 = arith.cmpi eq, %arg2, %c0_i32_8 : i32
    %10 = arith.extui %9 : i1 to i32
    %c0_i32_9 = arith.constant 0 : i32
    %11 = arith.cmpi ne, %10, %c0_i32_9 : i32
    scf.if %11 {
      %c0_10 = arith.constant 0 : index
      %c0_11 = arith.constant 0 : index
      %12 = vector.load %arg7[%c0_10, %c0_11] : memref<16x96xf32, #tpu.memory_space<vmem>>, vector<16x96xf32>
      %c0_12 = arith.constant 0 : index
      %c0_13 = arith.constant 0 : index
      %13 = vector.load %arg5[%c0_12, %c0_13] : memref<1x96xf32, #tpu.memory_space<vmem>>, vector<1x96xf32>
      %14 = vector.broadcast %13 : vector<1x96xf32> to vector<16x96xf32>
      %15 = arith.addf %12, %14 : vector<16x96xf32>
      %c0_14 = arith.constant 0 : index
      %c0_15 = arith.constant 0 : index
      %16 = vector.load %arg6[%c0_14, %c0_15] : memref<16x96xf32, #tpu.memory_space<vmem>>, vector<16x96xf32>
      tpu.vector_store %arg6[%c0_14, %c0_15], %15 {strides = array<i32>} : memref<16x96xf32, #tpu.memory_space<vmem>>, vector<16x96xf32>,
    } else {
    }
    return
  }
  func.func @transform_0(%arg0: i32, %arg1: i32, %arg2: i32) -> (i32, i32) {
    %c0_i32 = arith.constant 0 : i32
    return %arg0, %arg2 : i32, i32
  }
  func.func @transform_1(%arg0: i32, %arg1: i32, %arg2: i32) -> (i32, i32) {
    %c0_i32 = arith.constant 0 : i32
    return %arg1, %arg2 : i32, i32
  }
  func.func @transform_2(%arg0: i32, %arg1: i32, %arg2: i32) -> (i32, i32) {
    %c0_i32 = arith.constant 0 : i32
    %c0_i32_0 = arith.constant 0 : i32
    return %c0_i32, %arg1 : i32, i32
  }
  func.func @transform_3(%arg0: i32, %arg1: i32, %arg2: i32) -> (i32, i32) {
    %c0_i32 = arith.constant 0 : i32
    return %arg0, %arg1 : i32, i32
  }
}

</mosaic_0001>

<bundles_post_ra>
// kernel: self_attention.2
= control target key start
LH: loop header
LB: loop body
LE: loop exit
PB: predicated region body
PF: predicated region fallthrough
CT: control target
= control target key end

     0   :  { %8 = vsyncpa [#allocation4], 0  ;;  %s556_s0 = inlined_call_operand.hbm [shape: f32[16,32], index: 0, kind: input, shape index: {}]   ;;  %s557_s1 = inlined_call_operand.hbm [shape: f32[96,32], index: 1, kind: input, shape index: {}]   ;;  %s558_s2 = inlined_call_operand.hbm [shape: f32[1,96], index: 2, kind: input, shape index: {}]   ;;  %s559_s3 = inlined_call_operand.hbm [shape: f32[16,96], index: 3, kind: output, shape index: {}]  }
   0x1   :  { %9 = vsyncpa [#allocation7], 0 }
   0x2   :  { %10 = vsyncpa [#allocation5], 0  ;;  %s427_s12 = smov [#allocation6]   ;;  %s428_s14 = smov [#allocation3]  }
   0x3   :  { %s28_s13 = sshll.u32 %s427_s12, 4  ;;  %s16_s15 = sshll.u32 %s428_s14, 4  ;;  %s29_s13 = int_to_ptr.vmem [resolvable:$true] %s28_s13  ;;  %s454_s15 = int_to_ptr.vmem [resolvable:$true] %s16_s15 }
   0x4   :  { %s333_s18 = scalar_lea.hbm %s557_s1, 1536 }
   0x5   :  { %p334_p0 = scmp.ne.s32.totalorder %s557_s1, %s333_s18  ;;  %p337_p1 = scmp.lt.u32.totalorder %s333_s18, %s557_s1 }
   0x7   :  { %p339_p2 = pnand %p337_p1, %p334_p0 }
   0x9   :  { %342 = shalt.err (!%p339_p2)
}
   0xa   :  { %s343_s23 = scalar_lea.vmem %s29_s13, 1536  ;;  %p348_p4 = scmp.lt.s32.totalorder %s29_s13, %s29_s13 }
   0xb   :  { %p344_p3 = scmp.ne.s32.totalorder %s29_s13, %s343_s23  ;;  %p349_p5 = scmp.lt.s32.totalorder %s343_s23, %s343_s23 }
   0xd   :  { %p350_p6 = por %p349_p5, %p348_p4 }
   0xf   :  { %p351_p7 = pnand %p350_p6, %p344_p3 }
  0x11   :  { %354 = shalt.err (!%p351_p7)
}
  0x12   :  { %s429_s24 = smov 128   ;;  %s430_s25 = smov 8  }
  0x13   :  { %34 = dma.hbm_to_vmem [thread:$0]  %s557_s1, 1536, %s29_s13, [#allocation7], %s429_s24, %s429_s24, %s430_s25  }
  0x14   :  { %s355_s30 = scalar_lea.hbm %s556_s0, 256 }
  0x15   :  { %p356_p8 = scmp.ne.s32.totalorder %s556_s0, %s355_s30  ;;  %p359_p9 = scmp.lt.u32.totalorder %s355_s30, %s556_s0 }
  0x17   :  { %p361_p10 = pnand %p359_p9, %p356_p8 }
  0x19   :  { %364 = shalt.err (!%p361_p10)
}
  0x1a   :  { %s365_s8 = scalar_lea.vmem %s454_s15, 256  ;;  %p370_p12 = scmp.lt.s32.totalorder %s454_s15, %s454_s15 }
  0x1b   :  { %p366_p11 = scmp.ne.s32.totalorder %s454_s15, %s365_s8  ;;  %p371_p13 = scmp.lt.s32.totalorder %s365_s8, %s365_s8 }
  0x1d   :  { %p372_p0 = por %p371_p13, %p370_p12 }
  0x1f   :  { %p373_p1 = pnand %p372_p0, %p366_p11 }
  0x21   :  { %376 = shalt.err (!%p373_p1)
}
  0x22   :  { %22 = dma.hbm_to_vmem [thread:$0]  %s556_s0, 256, %s454_s15, [#allocation4], %s429_s24, %s429_s24, %s430_s25  }
  0x23   :  { %s431_s10 = smov [#allocation8]   ;;  %s377_s14 = scalar_lea.hbm %s558_s2, 16 }
  0x24   :  { %s41_s11 = sshll.u32 %s431_s10, 4  ;;  %p378_p2 = scmp.ne.s32.totalorder %s558_s2, %s377_s14  ;;  %s42_s11 = int_to_ptr.vmem [resolvable:$true] %s41_s11 }
  0x25   :  { %p381_p3 = scmp.lt.u32.totalorder %s377_s14, %s558_s2 }
  0x27   :  { %p383_p4 = pnand %p381_p3, %p378_p2 }
  0x29   :  { %386 = shalt.err (!%p383_p4)
}
  0x2a   :  { %s387_s20 = scalar_lea.vmem %s42_s11, 16  ;;  %s391_s0 = scalar_lea.vmem %s42_s11, 32 }
  0x2b   :  { %p388_p5 = scmp.ne.s32.totalorder %s42_s11, %s387_s20  ;;  %p392_p6 = scmp.lt.s32.totalorder %s42_s11, %s42_s11 }
  0x2c   :  { %p393_p7 = scmp.lt.s32.totalorder %s391_s0, %s387_s20 }
  0x2e   :  { %p394_p8 = por %p393_p7, %p392_p6 }
  0x30   :  { %p395_p9 = pnand %p394_p8, %p388_p5 }
  0x32   :  { %398 = shalt.err (!%p395_p9)
}
  0x33   :  { %44 = dma.hbm_to_vmem [thread:$0]  %s558_s2, 16, %s42_s11, [#allocation7]  }
  0x34   :  { %421 = dma.done.wait [#allocation4], 256  }
  0x35   :  { %422 = vsyncadd [#allocation4], 4294967040 }
  0x36   :  { %423 = dma.done.wait [#allocation7], 1552  }
  0x37   :  { %424 = vsyncadd [#allocation7], 4294965744  ;;  %vm58_vm0 = vcmask 785408   ;;  %v432_v0 = vmov 0.0   ;;  %vm77_vm1 = vcmask 261120   ;;  %v65_v2 = vld [vmem:[#allocation6] sm:$0xff] }
  0x38   :  { %60 = vst.msk [vmem:[#allocation2 + $0x8] sm:$0xff] %vm58_vm0, %v432_v0  ;;  %59 = vst.msk [vmem:[#allocation2] sm:$0xff] %vm58_vm0, %v432_v0  ;;  %v66_v3 = vld [vmem:[#allocation6 + $0x8] sm:$0xff]  ;;  %v67_v4 = vld [vmem:[#allocation6 + $0x10] sm:$0xff]  ;;  %s433_s2 = smov [#allocation9]  }
  0x39   :  { %vm507_vm2 = vmpackc.low %vm77_vm1, %vm77_vm1  ;;  %v290_v5 = vpack.c.bf16 %v66_v3, %v65_v2  ;;  %v68_v6 = vld [vmem:[#allocation6 + $0x18] sm:$0xff]  ;;  %v63_v8 = vld [vmem:[#allocation3] sm:$0xff]  ;;  %s221_s22 = sshll.u32 %s433_s2, 4  ;;  %s222_s22 = int_to_ptr.vmem [resolvable:$true] %s221_s22 }
  0x3a   :  { %v296_v7 = vpack.c.bf16 %v68_v6, %v67_v4  ;;  %287 = vmatprep.mubr.msk.f32.mxu0 %vm77_vm1, %v63_v8  ;;  %v69_v9 = vld [vmem:[#allocation6 + $0x20] sm:$0xff]  ;;  %v70_v10 = vld [vmem:[#allocation6 + $0x28] sm:$0xff]  ;;  %v71_v12 = vld [vmem:[#allocation6 + $0x30] sm:$0xff]  ;;  %s399_s23 = scalar_lea.vmem %s222_s22, 256  ;;  %p404_p11 = scmp.lt.s32.totalorder %s222_s22, %s222_s22 }
  0x3b   :  { %292 = vmatprep.subr.msk.bf16.mxu0 %vm507_vm2, %v290_v5  ;;  %v302_v11 = vpack.c.bf16 %v70_v10, %v69_v9  ;;  %v72_v13 = vld [vmem:[#allocation6 + $0x38] sm:$0xff]  ;;  %v73_v15 = vld [vmem:[#allocation6 + $0x40] sm:$0xff]  ;;  %v74_v16 = vld [vmem:[#allocation6 + $0x48] sm:$0xff]  ;;  %p400_p10 = scmp.ne.s32.totalorder %s222_s22, %s399_s23  ;;  %p405_p12 = scmp.lt.s32.totalorder %s399_s23, %s399_s23 }
  0x3c   :  { %295 = vmatpush3.bf16.xpose.msk.msra.mxu0 %vm507_vm2, %v290_v5  ;;  %v308_v14 = vpack.c.bf16 %v72_v13, %v71_v12  ;;  %v314_v17 = vpack.c.bf16 %v74_v16, %v73_v15  ;;  %v75_v18 = vld [vmem:[#allocation6 + $0x50] sm:$0xff]  ;;  %v76_v19 = vld [vmem:[#allocation6 + $0x58] sm:$0xff]  ;;  %v248_v28 = vld [vmem:[#allocation8] ss:$0 sm:$0xff] }
  0x3d   :  { %298 = vmatprep.subr.msk.bf16.mxu0 %vm507_vm2, %v296_v7  ;;  %v320_v20 = vpack.c.bf16 %v76_v19, %v75_v18  ;;  %v64_v21 = vld [vmem:[#allocation3 + $0x8] sm:$0xff]  ;;  %p406_p13 = por %p405_p12, %p404_p11 }
  0x3f   :  { %v62_v22 = vld [vmem:[#allocation2 + $0x8] sm:$0xff]  ;;  %v61_v23 = vld [vmem:[#allocation2] sm:$0xff]  ;;  %p407_p0 = pnand %p406_p13, %p400_p10 }
  0x44   :  { %301 = vmatpush3.bf16.xpose.msk.msra.mxu0 %vm507_vm2, %v296_v7 }
  0x45   :  { %304 = vmatprep.subr.msk.bf16.mxu0 %vm507_vm2, %v302_v11 }
  0x4c   :  { %307 = vmatpush3.bf16.xpose.msk.msra.mxu0 %vm507_vm2, %v302_v11 }
  0x4d   :  { %310 = vmatprep.subr.msk.bf16.mxu0 %vm507_vm2, %v308_v14 }
  0x54   :  { %313 = vmatpush3.bf16.xpose.msk.msra.mxu0 %vm507_vm2, %v308_v14 }
  0x55   :  { %316 = vmatprep.subr.msk.bf16.mxu0 %vm507_vm2, %v314_v17 }
  0x5c   :  { %319 = vmatpush3.bf16.xpose.msk.msra.mxu0 %vm507_vm2, %v314_v17 }
  0x5d   :  { %322 = vmatprep.subr.msk.bf16.mxu0 %vm507_vm2, %v320_v20 }
  0x64   :  { %325 = vmatpush3.bf16.xpose.msk.msra.mxu0 %vm507_vm2, %v320_v20 }
  0x6b   :  { %288 = vmatmul.mubr.msk.f32.vlgmr.msra.gmra.mrb[0].mxu0 %vm77_vm1, %v64_v21 }
 0x13e   :  { %v289_v24 = vpop.f32.mrb[0].mxu0 }
 0x13f   :  { %v196_v25 = vadd.f32 %v289_v24, %v62_v22  ;;  %v186_v26 = vpop.f32.mrb[1].mxu0 }
 0x140   :  { %v195_v27 = vadd.f32 %v186_v26, %v61_v23 }
 0x141   :  { %199 = vst.msk [vmem:[#allocation2 + $0x8] sm:$0xff] %vm58_vm0, %v196_v25 }
 0x142   :  { %198 = vst.msk [vmem:[#allocation2] sm:$0xff] %vm58_vm0, %v195_v27 }
 0x148   :  { %v204_v29 = vld [vmem:[#allocation2 + $0x8] sm:$0xff] }
 0x149   :  { %v203_v30 = vld [vmem:[#allocation2] sm:$0xff]  ;;  %v213_v31 = vadd.f32 %v248_v28, %v204_v29 }
 0x14a   :  { %v212_v32 = vadd.f32 %v248_v28, %v203_v30 }
 0x14b   :  { %215 = vst.msk [vmem:[#allocation9 + $0x8] sm:$0xff] %vm58_vm0, %v213_v31 }
 0x14c   :  { %214 = vst.msk [vmem:[#allocation9] sm:$0xff] %vm58_vm0, %v212_v32 }
 0x14d   :  { %410 = shalt.err (!%p407_p0)
}
 0x14e   :  { %s411_s28 = scalar_lea.hbm %s559_s3, 256 }
 0x14f   :  { %p412_p1 = scmp.ne.s32.totalorder %s559_s3, %s411_s28  ;;  %p415_p2 = scmp.lt.u32.totalorder %s411_s28, %s559_s3 }
 0x151   :  { %p417_p3 = pnand %p415_p2, %p412_p1 }
 0x153   :  { %420 = shalt.err (!%p417_p3)
}
 0x154   :  { %227 = dma.vmem_to_hbm [thread:$0]  %s222_s22, 256, %s559_s3, [#allocation5], %s429_s24, %s429_s24, %s430_s25  }
 0x155   :  { %425 = dma.done.wait [#allocation5], 256  }
 0x156   :  { %426 = vsyncadd [#allocation5], 4294967040 }
 0x157   :  { %231 = vsyncpa [#allocation4], 1 }
 0x158   :  { %232 = vsyncpa [#allocation7], 1 }
 0x159   :  { %233 = vsyncpa [#allocation5], 1 }

// kernel: self_attention.3
= control target key start
LH: loop header
LB: loop body
LE: loop exit
PB: predicated region body
PF: predicated region fallthrough
CT: control target
= control target key end

     0   :  { %s1242_s0 = inlined_call_operand.hbm [shape: f32[2,8,32], index: 0, kind: input, shape index: {}]   ;;  %s1243_s1 = inlined_call_operand.hbm [shape: f32[2,8,32], index: 1, kind: input, shape index: {}]   ;;  %s1244_s2 = inlined_call_operand.hbm [shape: f32[2,8,32], index: 2, kind: input, shape index: {}]   ;;  %s1245_s3 = inlined_call_operand.hbm [shape: f32[2,8,32], index: 3, kind: output, shape index: {}]  }
   0x1   :  { %1251 = sst [smem:[#allocation18_spill]] %s1243_s1 }
   0x2   :  { %8 = vsyncpa [#allocation6], 0 }
   0x3   :  { %10 = vsyncpa [#allocation6 + $0x1], 0 }
   0x4   :  { %11 = vsyncpa [#allocation9], 0 }
   0x5   :  { %13 = vsyncpa [#allocation9 + $0x1], 0 }
   0x6   :  { %14 = vsyncpa [#allocation7], 0 }
   0x7   :  { %16 = vsyncpa [#allocation7 + $0x1], 0  ;;  %s966_s12 = smov 0   ;;  %s968_s13 = smov 0  }
   0x8   :  { %s970_s14 = smov 0   ;;  %s972_s15 = smov 0  }
   0x9   :  { %s974_s16 = smov 0   ;;  %s976_s17 = smov 0  }
   0xa LB: > { %1252 = sst [smem:[#allocation15_spill]] %s932_s16  ;;  %s997_s18 = sadd.s32 4294967295, %s936_s17   ;;  %s936_s17 = sphi %s976_s17, %s22_s17   ;;  %s932_s16 = sphi %s974_s16, %s1273_s16   ;;  %s928_s15 = sphi %s972_s15, %s1272_s15   ;;  %s924_s14 = sphi %s970_s14, %s1276_s14   ;;  %s920_s13 = sphi %s968_s13, %s1275_s13   ;;  %s916_s12 = sphi %s966_s12, %s1274_s12  }
   0xb   : > { %s641_s19 = sadd.s32 4294967294, %s936_s17   ;;  %s41_s20 = sadd.s32 1, %s932_s16 }
   0xc   : > { %s50_s21 = sadd.s32 1, %s924_s14  ;;  %p43_p0 = scmp.ge.s32.totalorder %s41_s20, 2 }
   0xd   : > { %p57_p1 = scmp.ne.s32.totalorder %s924_s14, %s920_s13  ;;  %p58_p2 = scmp.eq.s32.totalorder %s936_s17, 0 }
   0xe   : > { %p63_p3 = scmp.ne.s32.totalorder %s920_s13, %s916_s12  ;;  %s1278_s20 = smov (%p43_p0, %s41_s20), 0 }
   0xf   : > { %1253 = sst [smem:[#allocation16_spill]] %s1278_s20  ;;  %p1009_p4 = por %p58_p2, %p57_p1 }
  0x10   : > { %p64_p5 = scmp.eq.s32.totalorder %s997_s18, 0  ;;  %s45_s23 = ssub.s32 %s932_s16, %s1278_s20 }
  0x11   : > { %p145_p6 = scmp.eq.s32.totalorder %s997_s18, 1  ;;  %p48_p7 = scmp.eq.s32.totalorder %s45_s23, 0 }
  0x12   : > { %p1017_p8 = por %p64_p5, %p63_p3  ;;  %p151_p10 = scmp.eq.s32.totalorder %s641_s19, 1 }
  0x13   : > { %p1021_p9 = por %p145_p6, %p57_p1  ;;  %p698_p13 = scmp.lt.s32.totalorder %s936_s17, 2 }
  0x14   : > { %s1255_s24 = scalar_select %p1017_p8, 1, 0 }
  0x15   : > { %s1256_s25 = scalar_select %p1021_p9, 1, 0 }
  0x16   : > { %s1026_s26 = scalar_select %p48_p7, %s924_s14, %s50_s21  }
  0x17   : > { %p1028_p11 = por %p151_p10, %p63_p3  ;;  %s171_s28 = sand.u32 1, %s924_s14  }
  0x18   : > { %1257 = sst [smem:[#allocation17_spill]] %s1026_s26  ;;  %s1037_s29 = sshll.u32 %s171_s28, 3 }
  0x19   : > { %s1258_s27 = scalar_select %p1028_p11, 1, 0 }
  0x1a   : > { %s1040_s30 = sshll.u32 %s932_s16, 7  ;;  %p1044_p0 = pnand %p698_p13, %p1009_p4 }
  0x1b   : > { %s190_s5 = sand.u32 1, %s936_s17   ;;  %s1260_s1 = sld [smem:[#allocation18_spill]] }
  0x1c   : > { %s1259_s4 = scalar_select %p1044_p0, 1, 0 }
  0x1d   : > { %s194_s9 = scalar_lea.vmem [#allocation8], %s1037_s29  ;;  %s1060_s11 = scalar_lea.sflag [#allocation9], %s190_s5 }
  0x1e   : > { %s202_s10 = sshll.u32 %s194_s9, 4  ;;  %p1066_p4 = pneg %p1044_p0  ;;  %s1057_s10 = int_to_ptr.vmem [resolvable:$true] %s202_s10 }
  0x21   : > { %s1053_s8 = scalar_lea.hbm %s1260_s1, %s1040_s30  ;;  %s765_s6 = scalar_lea.hbm %s1260_s1, 256 }
  0x22   : > { %s760_s19 = scalar_lea.hbm %s1053_s8, 128  ;;  %p766_p7 = scmp.lt.u32.totalorder %s1053_s8, %s1260_s1 }
  0x23   : > { %p761_p3 = scmp.ne.s32.totalorder %s1053_s8, %s760_s19  ;;  %p767_p10 = scmp.lt.u32.totalorder %s765_s6, %s760_s19 }
  0x24   : > { %p769_p12 = scmp.lt.u32.totalorder %s760_s19, %s1053_s8 }
  0x25   : > { %p763_p5 = pnand %p1066_p4, %p761_p3  ;;  %p768_p13 = por %p767_p10, %p766_p7 }
  0x27   : > { %p764_p6 = pneg %p763_p5  ;;  %p770_p1 = por %p769_p12, %p768_p13 }
  0x29   : > { %p771_p2 = pnand %p770_p1, %p764_p6 }
  0x2b   : > { %774 = shalt.err (!%p771_p2)
}
  0x2c   : > { %s775_s5 = scalar_lea.vmem %s1057_s10, 128  ;;  %s938_s22 = smov [#allocation8]  }
  0x2d   : > { %p776_p3 = scmp.ne.s32.totalorder %s1057_s10, %s775_s5  ;;  %s780_s23 = sshll.u32 %s938_s22, 4  ;;  %s781_s23 = int_to_ptr.vmem [resolvable:$false] %s780_s23 }
  0x2e   : > { %s782_s7 = scalar_lea.vmem %s781_s23, 256  ;;  %p783_p9 = scmp.lt.s32.totalorder %s1057_s10, %s781_s23 }
  0x2f   : > { %p778_p5 = pnand %p776_p3, %p1066_p4  ;;  %p784_p8 = scmp.lt.s32.totalorder %s782_s7, %s775_s5 }
  0x31   : > { %p779_p11 = pneg %p778_p5  ;;  %p785_p7 = por %p784_p8, %p783_p9 }
  0x33   : > { %p786_p10 = pnand %p785_p7, %p779_p11 }
  0x35   : > { %789 = shalt.err (!%p786_p10)
}
  0x36   : > { %690 = dma.hbm_to_vmem [thread:$0]  (!%p1044_p0), %s1053_s8, 128, %s1057_s10, %s1060_s11  }
  0x37   : > { %p1262_p12 = scmp.lt.s32.totalorder %s936_s17, 3  ;;  %p1263_p1 = scmp.ge.s32.totalorder %s936_s17, 1 }
  0x38   : > { %s1102_s5 = scalar_lea.hbm %s1242_s0, %s1040_s30  ;;  %s175_s22 = scalar_lea.vmem [#allocation5], %s1037_s29 }
  0x39   : > { %p1094_p2 = pnand %p1263_p1, %p1262_p12  ;;  %s183_s23 = sshll.u32 %s175_s22, 4  ;;  %s1105_s23 = int_to_ptr.vmem [resolvable:$true] %s183_s23 }
  0x3a   : > { %s1111_s7 = scalar_lea.hbm %s1244_s2, %s1040_s30  ;;  %s172_s1 = scalar_lea.sflag [#allocation6], %s171_s28 }
  0x3b   : > { %s1264_s19 = scalar_select %p1094_p2, 1, 0 }
  0x3c   : > { %s790_s20 = scalar_lea.hbm %s1102_s5, 128  ;;  %s795_s16 = scalar_lea.hbm %s1242_s0, 256 }
  0x3d   : > { %p791_p8 = scmp.ne.s32.totalorder %s1102_s5, %s790_s20  ;;  %p796_p6 = scmp.lt.u32.totalorder %s1102_s5, %s1242_s0 }
  0x3e   : > { %p797_p13 = scmp.lt.u32.totalorder %s795_s16, %s790_s20  ;;  %p799_p5 = scmp.lt.u32.totalorder %s790_s20, %s1102_s5 }
  0x3f   : > { %p793_p9 = pnand %p791_p8, %p1066_p4 }
  0x40   : > { %p798_p3 = por %p797_p13, %p796_p6 }
  0x41   : > { %p794_p11 = pneg %p793_p9 }
  0x42   : > { %p800_p7 = por %p799_p5, %p798_p3 }
  0x44   : > { %p801_p10 = pnand %p800_p7, %p794_p11 }
  0x46   : > { %804 = shalt.err (!%p801_p10)
}
  0x47   : > { %s805_s28 = scalar_lea.vmem %s1105_s23, 128  ;;  %s939_s30 = smov [#allocation5]  }
  0x48   : > { %p806_p12 = scmp.ne.s32.totalorder %s1105_s23, %s805_s28  ;;  %s810_s8 = sshll.u32 %s939_s30, 4  ;;  %s811_s8 = int_to_ptr.vmem [resolvable:$false] %s810_s8 }
  0x49   : > { %s812_s26 = scalar_lea.vmem %s811_s8, 256  ;;  %p813_p9 = scmp.lt.s32.totalorder %s1105_s23, %s811_s8 }
  0x4a   : > { %p808_p1 = pnand %p806_p12, %p1066_p4  ;;  %p814_p2 = scmp.lt.s32.totalorder %s812_s26, %s805_s28 }
  0x4c   : > { %p809_p8 = pneg %p808_p1  ;;  %p815_p6 = por %p814_p2, %p813_p9 }
  0x4e   : > { %p816_p13 = pnand %p815_p6, %p809_p8 }
  0x50   : > { %819 = shalt.err (!%p816_p13)
}
  0x51   : > { %687 = dma.hbm_to_vmem [thread:$0]  (!%p1044_p0), %s1102_s5, 128, %s1105_s23, %s172_s1  }
  0x52   : > { %s213_s16 = scalar_lea.vmem [#allocation10], %s1037_s29  ;;  %s820_s10 = scalar_lea.hbm %s1111_s7, 128 }
  0x53   : > { %s221_s20 = sshll.u32 %s213_s16, 4  ;;  %p821_p11 = scmp.ne.s32.totalorder %s1111_s7, %s820_s10  ;;  %s222_s20 = int_to_ptr.vmem [resolvable:$true] %s221_s20 }
  0x54   : > { %s825_s22 = scalar_lea.hbm %s1244_s2, 256  ;;  %p826_p5 = scmp.lt.u32.totalorder %s1111_s7, %s1244_s2 }
  0x55   : > { %p823_p2 = pnand %p821_p11, %p1066_p4  ;;  %p827_p7 = scmp.lt.u32.totalorder %s825_s22, %s820_s10 }
  0x56   : > { %p829_p12 = scmp.lt.u32.totalorder %s820_s10, %s1111_s7 }
  0x57   : > { %p824_p3 = pneg %p823_p2  ;;  %p828_p10 = por %p827_p7, %p826_p5 }
  0x59   : > { %p830_p1 = por %p829_p12, %p828_p10 }
  0x5b   : > { %p831_p8 = pnand %p830_p1, %p824_p3 }
  0x5d   : > { %834 = shalt.err (!%p831_p8)
}
  0x5e   : > { %s835_s1 = scalar_lea.vmem %s222_s20, 128  ;;  %s940_s29 = smov [#allocation10]  }
  0x5f   : > { %p836_p9 = scmp.ne.s32.totalorder %s222_s20, %s835_s1  ;;  %s840_s5 = sshll.u32 %s940_s29, 4  ;;  %s841_s5 = int_to_ptr.vmem [resolvable:$false] %s840_s5 }
  0x60   : > { %s842_s23 = scalar_lea.vmem %s841_s5, 256  ;;  %p843_p11 = scmp.lt.s32.totalorder %s222_s20, %s841_s5 }
  0x61   : > { %p838_p6 = pnand %p836_p9, %p1066_p4  ;;  %p844_p2 = scmp.lt.s32.totalorder %s842_s23, %s835_s1 }
  0x63   : > { %p839_p13 = pneg %p838_p6  ;;  %p845_p0 = por %p844_p2, %p843_p11 }
  0x65   : > { %p846_p5 = pnand %p845_p0, %p839_p13 }
  0x67   : > { %849 = shalt.err (!%p846_p5)
}
  0x68   : > { %p1265_p7 = scmp.ne.s32.totalorder %s1259_s4, 0  ;;  %p1266_p3 = scmp.ne.s32.totalorder %s1264_s19, 0 }
  0x69   : > { %s1158_s21 = sand.u32 (!%p1266_p3), 1, %s920_s13   ;;  %p1267_p0 = scmp.ne.s32.totalorder (!%p1266_p3), %s1255_s24, 0 }
  0x6a   : > { %693 = dma.hbm_to_vmem [thread:$0]  (!%p1265_p7), %s1111_s7, 128, %s222_s20, %s1060_s11  }
  0x6b   : > { %230 = sbr.rel (%p1266_p3) target bundleno = 932 (0x3a4), region = 32  ;;  %s1161_s8 = sshll.u32 (!%p1266_p3), %s1158_s21, 3 }
  0x6c   : > { %s233_s26 = scalar_lea.sflag (!%p1266_p3), [#allocation6], %s1158_s21  ;;  %s236_s16 = scalar_lea.vmem (!%p1266_p3), [#allocation5], %s1161_s8 }
  0x72   : > { %903 = dma.done.wait (%p1267_p0), %s233_s26, 128  }
  0x73   : > { %905 = vsyncadd (%p1267_p0), %s233_s26, 4294967168  ;;  %s241_s4 = sand.u32 1, %s997_s18   ;;  %s245_s19 = scalar_lea.vmem [#allocation8], %s1161_s8 }
  0x74   : > { %s242_s11 = scalar_lea.sflag [#allocation9], %s241_s4 }
  0x75   : > { %907 = dma.done.wait (%p1267_p0), %s242_s11, 256  }
  0x76   : > { %909 = vsyncadd (%p1267_p0), %s242_s11, 4294967040  ;;  %vm294_vm0 = vcmask 261120   ;;  %v941_v0 = vmov 0.0   ;;  %vm942_vm1 = vmmov 0   ;;  %v297_v1 = vld [vmem:[%s245_s19] sm:$0xff]  ;;  %v296_v2 = vld [vmem:[%s236_s16] sm:$0xff] }
  0x77   : > { %666 = vmatprep.subr.mxu0 %v941_v0  ;;  %295 = vst.msk [vmem:[#allocation4] sm:$0xff] %vm294_vm0, %v941_v0  ;;  %668 = vmatprep.mubr.msk.f32.mxu0 %vm942_vm1, %v941_v0  ;;  %vm291_vm2 = vcmask 7168   ;;  %v943_v3 = vmov -inf   ;;  %vm376_vm3 = vcmask 64512   ;;  %v944_v7 = vmov 0   ;;  %s254_s18 = scalar_lea.vmem [#allocation10], %s1161_s8 }
  0x78   : > { %671 = vmatprep.subr.mxu1 %v941_v0  ;;  %673 = vmatprep.mubr.msk.f32.mxu1 %vm942_vm1, %v941_v0  ;;  %292 = vst.msk [vmem:[#allocation2] sm:$0xff] %vm291_vm2, %v943_v3  ;;  %293 = vst.msk [vmem:[#allocation3] sm:$0xff] %vm291_vm2, %v941_v0  ;;  %v407_v12 = vld [vmem:[%s254_s18] sm:$0xff]  ;;  %s659_s24 = sshll.u32 %s928_s15, 7  ;;  %s286_s7 = scalar_lea.vmem [#allocation11], %s1161_s8 }
  0x79   : > { %667 = vmatpush3.xpose.msk.msra.mxu0 %vm294_vm0, %v297_v1  ;;  %752 = vset.pattern.permute.xlu0 %v944_v7  ;;  %s512_s20 = sshll.u32 %s286_s7, 4  ;;  %s1192_s9 = scalar_lea.hbm %s1245_s3, %s659_s24  ;;  %s1194_s20 = int_to_ptr.vmem [resolvable:$true] %s512_s20 }
  0x7a   : > { %753 = vset.pattern.permute.xlu1 %v944_v7  ;;  %672 = vmatpush3.msra.mxu1 %v407_v12  ;;  %s498_s22 = scalar_lea.sflag [#allocation7], %s1158_s21  ;;  %s850_s28 = scalar_lea.vmem %s1194_s20, 128 }
  0x7b   : > { %p851_p4 = scmp.ne.s32.totalorder %s1194_s20, %s850_s28  ;;  %p1268_p10 = scmp.ne.s32.totalorder %s1256_s25, 0 }
  0x7c   : > { %669 = vmatmul.mubr.msk.f32.vlgmr.msra.gmra.mrb[0].mxu0 %vm294_vm0, %v296_v2  ;;  %s945_s15 = smov [#allocation11]  }
  0x7d   : > { %p852_p12 = pnand %p851_p4, %p1268_p10  ;;  %s854_s30 = sshll.u32 %s945_s15, 4  ;;  %s855_s30 = int_to_ptr.vmem [resolvable:$false] %s854_s30 }
  0x7e   : > { %v400_v25 = vld [vmem:[#allocation4] sm:$0xff]  ;;  %s856_s1 = scalar_lea.vmem %s855_s30, 256  ;;  %p857_p8 = scmp.lt.s32.totalorder %s1194_s20, %s855_s30 }
  0x7f   : > { %v375_v8 = vld [vmem:[#allocation2] sm:$0xff]  ;;  %v392_v20 = vld [vmem:[#allocation3] sm:$0xff]  ;;  %p853_p1 = pneg %p852_p12  ;;  %p858_p9 = scmp.lt.s32.totalorder %s856_s1, %s850_s28 }
  0x81   : > { %p859_p6 = por %p858_p9, %p857_p8 }
  0x83   : > { %p860_p13 = pnand %p859_p6, %p853_p1 }
 0x14f   : > { %v371_v4 = vpop.f32.mrb[0].mxu0 }
 0x150   : > { %v670_v5 = vpop.f32.mrb[1].mxu0  ;;  %v377_v6 = vsel %vm376_vm3, %v371_v4, -inf }
 0x151   : > { %378 = vmax.xlane.f32.xlu0 %v377_v6 }
 0x1de   : > { %v379_v9 = vpop.xlane.xlu0 %378 }
 0x1df   : > { %v380_v10 = vmax.f32 %v375_v8, %v379_v9 }
 0x1e1   : > { %v381_v11 = vsub.f32 %v375_v8, %v380_v10  ;;  %483 = vst.msk [vmem:[#allocation2] sm:$0xff] %vm291_vm2, %v380_v10  ;;  %386 = vperm.xlu0 %752, %v380_v10  }
 0x1e3   : > { %v382_v18 = vmul.f32 1.442695, %v381_v11 }
 0x260   : > { %v387_v13 = vpop.permute.xlu0 %386 }
 0x261   : > { %v389_v14 = vsub.f32 %v371_v4, %v387_v13 }
 0x263   : > { %v390_v15 = vmul.f32 1.442695, %v389_v14 }
 0x265   : > { %754 = vpow2.f32 %v390_v15 }
 0x266   : > { %756 = vpow2.f32 %v382_v18 }
 0x26f   : > { %v755_v16 = vpop.eup %754 }
 0x270   : > { %674 = vmatmul.mubr.msk.f32.vlgmr.msra.gmra.mrb[0].mxu1 %vm376_vm3, %v755_v16  ;;  %v394_v17 = vsel %vm376_vm3, %v755_v16, 0.0  ;;  %v757_v19 = vpop.eup %756 }
 0x271   : > { %395 = vadd.xlane.f32.xlu1 %v394_v17  ;;  %v393_v21 = vmul.f32 %v757_v19, %v392_v20 }
 0x282   : > { %403 = vperm.xlu1 %753, %v757_v19  }
 0x2fe   : > { %v396_v22 = vpop.xlane.xlu1 %395 }
 0x2ff   : > { %v397_v23 = vadd.f32 %v396_v22, %v393_v21 }
 0x301   : > { %399 = vst.msk [vmem:[#allocation3] sm:$0xff] %vm291_vm2, %v397_v23 }
 0x302   : > { %v404_v26 = vpop.permute.xlu1 %403 }
 0x303   : > { %v406_v27 = vmul.f32 %v404_v26, %v400_v25 }
 0x308   : > { %v488_v24 = vld [vmem:[#allocation3] sm:$0xff] }
 0x309   : > { %491 = vperm.xlu1 %753, %v488_v24  }
 0x343   : > { %v477_v28 = vpop.f32.mrb[0].mxu1 }
 0x344   : > { %v481_v29 = vadd.f32 %v477_v28, %v406_v27  ;;  %v675_v30 = vpop.f32.mrb[1].mxu1 }
 0x346   : > { %482 = vst.msk [vmem:[#allocation4] sm:$0xff] %vm294_vm0, %v481_v29 }
 0x34d   : > { %v487_v33 = vld [vmem:[#allocation4] sm:$0xff] }
 0x388   : > { %v492_v31 = vpop.permute.xlu1 %491 }
 0x389   : > { %758 = vrcp.f32 %v492_v31 }
 0x393   : > { %v759_v32 = vpop.eup %758 }
 0x394   : > { %v495_v34 = vmul.f32 %v759_v32, %v487_v33 }
 0x396   : > { %496 = vst.msk [vmem:[%s286_s7] sm:$0xff] %vm294_vm0, %v495_v34 }
 0x397   : > { %863 = shalt.err (!%p860_p13)
}
 0x398   : > { %s864_s29 = scalar_lea.hbm %s1192_s9, 128  ;;  %s868_s21 = scalar_lea.hbm %s1245_s3, 256 }
 0x399   : > { %p865_p11 = scmp.ne.s32.totalorder %s1192_s9, %s864_s29  ;;  %p869_p7 = scmp.lt.u32.totalorder %s1192_s9, %s1245_s3 }
 0x39a   : > { %p870_p3 = scmp.lt.u32.totalorder %s868_s21, %s864_s29  ;;  %p872_p4 = scmp.lt.u32.totalorder %s864_s29, %s1192_s9 }
 0x39b   : > { %p866_p2 = pnand %p865_p11, %p1268_p10 }
 0x39c   : > { %p871_p0 = por %p870_p3, %p869_p7 }
 0x39d   : > { %p867_p5 = pneg %p866_p2 }
 0x39e   : > { %p873_p12 = por %p872_p4, %p871_p0 }
 0x3a0   : > { %p874_p1 = pnand %p873_p12, %p867_p5 }
 0x3a2   : > { %877 = shalt.err (!%p874_p1)
}
 0x3a3   : > { %682 = dma.vmem_to_hbm [thread:$0]  (%p1268_p10), %s1194_s20, 128, %s1192_s9, %s498_s22  }
 0x3a4 PF: > { %s524_s16 = sand.u32 1, %s916_s12   ;;  %p1269_p8 = scmp.ne.s32.totalorder %s1258_s27, 0 }
 0x3a5   : > { %p1270_p9 = scmp.ge.s32.totalorder %s936_s17, 2  ;;  %s525_s4 = scalar_lea.sflag [#allocation7], %s524_s16 }
 0x3a7   : > { %p695_p6 = pnand %p1270_p9, %p1269_p8 }
 0x3a9   : > { %911 = dma.done.wait (!%p695_p6), %s525_s4, 128  }
 0x3aa   : > { %913 = vsyncadd (!%p695_p6), %s525_s4, 4294967168  ;;  %s22_s17 = sadd.s32 1, %s936_s17   ;;  %s1271_s25 = sld [smem:[#allocation17_spill]] }
 0x3ab   : > { %p19_p13 = scmp.ge.s32.totalorder %s22_s17, 4   ;;  %s1272_s15 = sld [smem:[#allocation15_spill]] }
 0x3ac   : > { %s1273_s16 = sld [smem:[#allocation16_spill]]  ;;  %s1274_s12 = smov %s920_s13 }
 0x3ad   : > { %s1275_s13 = smov %s924_s14  ;;  %21 = sbr.rel (!%p19_p13) target bundleno = 10 (0xa), region = 109 }
 0x3b0   : > { %s1276_s14 = smov %s1271_s25 }
 0x3b4   :  { %530 = vsyncpa [#allocation6], 1 }
 0x3b5   :  { %532 = vsyncpa [#allocation6 + $0x1], 1 }
 0x3b6   :  { %533 = vsyncpa [#allocation9], 1 }
 0x3b7   :  { %535 = vsyncpa [#allocation9 + $0x1], 1 }
 0x3b8   :  { %536 = vsyncpa [#allocation7], 1 }
 0x3b9   :  { %538 = vsyncpa [#allocation7 + $0x1], 1 }

</bundles_post_ra>
